<compile_context>
chip_gen: v7x
topology: tpu7x:2x2x1
jax: 0.10.0
libtpu: 0.0.40
codegen_flags: <defaults>
</compile_context>

<pallas_src>
import functools

import jax
import jax.numpy as jnp
import numpy as np
from jax.experimental import pallas as pl
from jax.experimental.pallas import tpu as pltpu

F32_TINY = float(np.finfo(np.float32).tiny)  # == torch.finfo(torch.float).tiny


# ----------------------------- kernel bodies -----------------------------
def _epilogue(mean_loss, state_ref, out_ref, *, constraint, alpha, nu, tau):
    """Scalar EMA / beta-value update given the scalar mean loss."""
    value_old = state_ref[0]
    ema_old = state_ref[1]
    has_ema = state_ref[2]
    phase_old = state_ref[3]

    # EMA update (first ever call: ema := mean)
    ema_new = jnp.where(has_ema > 0.5,
                        alpha * mean_loss + (1.0 - alpha) * ema_old,
                        mean_loss)

    # once ema < constraint, leave the initial phase (never re-enters)
    phase_new = jnp.where(ema_new < constraint, jnp.float32(0.0), phase_old)

    # beta-value update (applied only when NOT in initial phase)
    delta = ema_new - constraint
    d_v = jnp.full((1, 1), delta, jnp.float32)   # tiny vregs: tanh/exp go to EUP
    v_v = jnp.full((1, 1), value_old, jnp.float32)

    def heaviside(x):
        # torch.heaviside(x, 0.5): 0 for x<0, 0.5 for x==0, 1 for x>0
        return jnp.where(x > 0.0, jnp.float32(1.0),
                         jnp.where(x < 0.0, jnp.float32(0.0), jnp.float32(0.5)))

    expo = nu * (heaviside(-d_v) * jnp.tanh(tau * (v_v - 1.0))
                 - heaviside(d_v)) * d_v
    updated = jnp.clip(v_v * jnp.exp(expo), F32_TINY, 1.0)
    updated_s = jnp.sum(updated)                 # (1,1) -> scalar

    new_value = jnp.where(phase_new > 0.5, value_old, updated_s)

    out_ref[0] = new_value
    out_ref[1] = ema_new
    out_ref[2] = jnp.float32(1.0)                # has_ema is True after any step
    out_ref[3] = phase_new


def _rewo_kernel_single(state_ref, loss_ref, out_ref, *,
                        constraint, alpha, nu, tau, inv_n):
    # Whole loss fits in one VMEM block: one reduce, then the scalar update.
    mean_loss = jnp.sum(loss_ref[...].astype(jnp.float32)) * inv_n
    _epilogue(mean_loss, state_ref, out_ref,
              constraint=constraint, alpha=alpha, nu=nu, tau=tau)


def _rewo_kernel_multi(state_ref, loss_ref, out_ref, acc_ref, *,
                       constraint, alpha, nu, tau, inv_n,
                       rows_total, tile_rows, need_mask):
    i = pl.program_id(0)

    @pl.when(i == 0)
    def _init():
        acc_ref[...] = jnp.zeros_like(acc_ref)

    tile = loss_ref[...].astype(jnp.float32)
    if need_mask:
        # Trailing block overruns the array; OOB buffer contents are
        # unspecified -> zero out rows beyond the true extent (cheap VALU).
        row_ids = jax.lax.broadcasted_iota(jnp.int32, tile.shape, 0) + i * tile_rows
        tile = jnp.where(row_ids < rows_total, tile, 0.0)
    acc_ref[...] += tile                          # VALU only, per step

    @pl.when(i == pl.num_programs(0) - 1)
    def _finalize():
        # the single cross-lane/sublane reduce of the whole kernel
        mean_loss = jnp.sum(acc_ref[...]) * inv_n
        _epilogue(mean_loss, state_ref, out_ref,
                  constraint=constraint, alpha=alpha, nu=nu, tau=tau)


# ----------------------------- wrapper -----------------------------
def _rewo_update(communication_loss, state, *, constraint, alpha, nu, tau,
                 max_block_elems=512 * 1024):
    """One scheduler step. `state` = packed (4,) f32: [value, ema, has_ema, phase]."""
    loss = communication_loss
    if loss.ndim == 0:
        loss = loss.reshape(1, 1)
    elif loss.ndim == 1:
        n = loss.shape[0]
        loss = loss.reshape(-1, 128) if (n % 128 == 0) else loss.reshape(1, -1)
    elif loss.ndim > 2:
        loss = loss.reshape(-1, loss.shape[-1])

    R, C = loss.shape
    n_elems = R * C
    itemsize = loss.dtype.itemsize
    common = dict(constraint=float(constraint), alpha=float(alpha),
                  nu=float(nu), tau=float(tau), inv_n=1.0 / float(n_elems))

    # Row tile: multiple of 8, capped so (2x input buffer + f32 accumulator)
    # stays a few MiB -> well inside the scoped-VMEM default on all chips.
    tr = max(8, (max_block_elems // max(C, 1)) // 8 * 8)

    if R <= tr:
        TR = R                                    # single block, full extent
        grid = (1,)
        kernel = functools.partial(_rewo_kernel_single, **common)
        scratch = []
    else:
        TR = tr
        grid = (pl.cdiv(R, TR),)
        kernel = functools.partial(_rewo_kernel_multi, **common,
                                   rows_total=R, tile_rows=TR,
                                   need_mask=(R % TR != 0))
        scratch = [pltpu.VMEM((TR, C), jnp.float32)]

    return pl.pallas_call(
        kernel,
        grid=grid,
        in_specs=[
            pl.BlockSpec(memory_space=pltpu.MemorySpace.SMEM),   # packed state
            pl.BlockSpec((TR, C), lambda i: (i, 0)),             # loss tile
        ],
        out_specs=pl.BlockSpec(memory_space=pltpu.MemorySpace.SMEM),
        out_shape=jax.ShapeDtypeStruct((4,), jnp.float32),
        scratch_shapes=scratch,
        compiler_params=pltpu.CompilerParams(
            dimension_semantics=("arbitrary",)),
        cost_estimate=pl.CostEstimate(
            flops=2 * n_elems,
            transcendentals=2,
            bytes_accessed=n_elems * itemsize + 8 * 4),
    )(state, loss)


class REWOBetaScheduler:
    """Stateful wrapper mirroring the PyTorch module; hot path runs in Pallas."""

    def __init__(self,
                 communication_loss_constraint: float = 0.3,
                 communication_loss_smoothing_factor: float = 0.1,
                 initial_value: float = F32_TINY,
                 nu: float = 1.0,
                 tau: float = 1.0,
                 _max_block_elems: int = 512 * 1024) -> None:
        self.communication_loss_constraint = communication_loss_constraint
        self.communication_loss_smoothing_factor = communication_loss_smoothing_factor
        self.nu = nu
        self.tau = tau
        self.training = True
        self._max_block_elems = _max_block_elems
        # packed state: [value, ema, has_ema, initial_phase]
        self._state = jnp.array([initial_value, 0.0, 0.0, 1.0], jnp.float32)

    # --- introspection helpers (match PyTorch attribute names) ---
    @property
    def value(self):
        return self._state[0]

    @property
    def communication_loss_ema(self):
        return self._state[1]

    @property
    def initial_phase(self):
        return bool(self._state[3] > 0.5)

    def __call__(self, step: int, acc, communication_loss):
        # `step` and `acc` are unused by the original forward as well.
        if not self.training:
            return self.value
        self._state = _rewo_update(
            communication_loss, self._state,
            constraint=self.communication_loss_constraint,
            alpha=self.communication_loss_smoothing_factor,
            nu=self.nu, tau=self.tau,
            max_block_elems=self._max_block_elems)
        return self._state[0]


# ---------------- pure-numpy reference for verification ----------------
class _RefREWO:
    def __init__(self, constraint=0.3, alpha=0.1, initial_value=F32_TINY,
                 nu=1.0, tau=1.0):
        self.constraint, self.alpha = constraint, alpha
        self.nu, self.tau = nu, tau
        self.value = np.float32(initial_value)
        self.ema = None
        self.initial_phase = True

    @staticmethod
    def _heaviside(x):
        return np.float32(1.0) if x > 0 else (np.float32(0.0) if x < 0 else np.float32(0.5))

    def __call__(self, step, acc, loss):
        mean = np.float32(np.asarray(loss, np.float32).mean())
        if self.ema is None:
            self.ema = mean
        else:
            self.ema = np.float32(self.alpha * mean + (1 - self.alpha) * self.ema)
        if self.ema < self.constraint:
            self.initial_phase = False
        if not self.initial_phase:
            delta = np.float32(self.ema - self.constraint)
            expo = self.nu * (self._heaviside(-delta) * np.tanh(self.tau * (self.value - 1.0))
                              - self._heaviside(delta)) * delta
            self.value = np.float32(np.clip(self.value * np.exp(expo), F32_TINY, 1.0))
        return self.value


if __name__ == "__main__":
    key = jax.random.PRNGKey(0)

    def check(out, ref_out):
        np.testing.assert_allclose(np.asarray(jax.block_until_ready(out)),
                                   ref_out, rtol=2e-5, atol=1e-6)

    # ---- 1) small shape, single-block path, initial-phase EMA tracking ----
    batch, seq = 8, 16
    sched = REWOBetaScheduler()
    ref = _RefREWO()
    for step, scale in enumerate([1.0, 0.6, 0.2, 0.1]):
        key, k1, k2 = jax.random.split(key, 3)
        comm_loss = scale * jax.random.uniform(k1, (batch, seq), jnp.float32)
        acc = jax.random.uniform(k2, (batch, seq), jnp.float32)  # unused by forward
        check(sched(step, acc, comm_loss), ref(step, np.asarray(acc), np.asarray(comm_loss)))

    # ---- 2) forced multi-block tiled path with an uneven (masked) last block ----
    sched2 = REWOBetaScheduler(_max_block_elems=16 * 128)   # TR=16 -> grid=3, 8 valid rows in last block
    ref2 = _RefREWO()
    for step, scale in enumerate([0.8, 0.25]):
        key, k1 = jax.random.split(key)
        comm_loss = scale * jax.random.uniform(k1, (40, 128), jnp.float32)
        check(sched2(step, None, comm_loss), ref2(step, None, np.asarray(comm_loss)))

    # ---- 3) exercise the post-initial-phase value updates (both heaviside branches) ----
    sched3 = REWOBetaScheduler(communication_loss_smoothing_factor=0.8, initial_value=0.5)
    ref3 = _RefREWO(alpha=0.8, initial_value=0.5)
    for step, scale in enumerate([1.0, 0.1, 0.4, 1.6]):
        key, k1 = jax.random.split(key)
        comm_loss = scale * jax.random.uniform(k1, (batch, seq), jnp.float32)
        check(sched3(step, None, comm_loss), ref3(step, None, np.asarray(comm_loss)))

    print("KERNEL_OK")
</pallas_src>

<mosaic_0001>
module attributes {stable_mosaic.version = 11 : i64} {
  func.func @_rewo_kernel_single(%arg0: i32, %arg1: memref<4xf32, #tpu.memory_space<smem>>, %arg2: memref<8x16xf32, #tpu.memory_space<vmem>>, %arg3: memref<4xf32, #tpu.memory_space<smem>>) attributes {dimension_semantics = [#tpu.dimension_semantics<arbitrary>], iteration_bounds = array<i64: 1>, scalar_prefetch = 0 : i64, scratch_operands = 0 : i64, tpu.core_type = #tpu.core_type<tc>, window_params = [{transform_indices = @transform_0, window_bounds = array<i64: 4>}, {transform_indices = @transform_1, window_bounds = array<i64: 8, 16>}, {transform_indices = @transform_2, window_bounds = array<i64: 4>}]} {
    %c0 = arith.constant 0 : index
    %c0_0 = arith.constant 0 : index
    %0 = vector.load %arg2[%c0, %c0_0] : memref<8x16xf32, #tpu.memory_space<vmem>>, vector<8x16xf32>
    %1 = vector.shape_cast %0 : vector<8x16xf32> to vector<1x8x16xf32>
    %cst = arith.constant dense<0.000000e+00> : vector<1xf32>
    %2 = vector.multi_reduction <add>, %1, %cst [1, 2] : vector<1x8x16xf32> to vector<1xf32>
    %3 = vector.shape_cast %2 : vector<1xf32> to vector<1x1x1xf32>
    %4 = vector.extract %3[0, 0, 0] : f32 from vector<1x1x1xf32>
    %cst_1 = arith.constant 7.812500e-03 : f32
    %5 = arith.mulf %4, %cst_1 : f32
    %c0_2 = arith.constant 0 : index
    %6 = memref.load %arg1[%c0_2] : memref<4xf32, #tpu.memory_space<smem>>
    %c1 = arith.constant 1 : index
    %7 = memref.load %arg1[%c1] : memref<4xf32, #tpu.memory_space<smem>>
    %c2 = arith.constant 2 : index
    %8 = memref.load %arg1[%c2] : memref<4xf32, #tpu.memory_space<smem>>
    %c3 = arith.constant 3 : index
    %9 = memref.load %arg1[%c3] : memref<4xf32, #tpu.memory_space<smem>>
    %cst_3 = arith.constant 5.000000e-01 : f32
    %10 = arith.cmpf ogt, %8, %cst_3 : f32
    %cst_4 = arith.constant 1.000000e-01 : f32
    %11 = arith.mulf %cst_4, %5 : f32
    %cst_5 = arith.constant 0.899999976 : f32
    %12 = arith.mulf %cst_5, %7 : f32
    %13 = arith.addf %11, %12 : f32
    %14 = arith.select %10, %13, %5 : f32
    %cst_6 = arith.constant 3.000000e-01 : f32
    %15 = arith.cmpf olt, %14, %cst_6 : f32
    %cst_7 = arith.constant 0.000000e+00 : f32
    %16 = arith.select %15, %cst_7, %9 : f32
    %cst_8 = arith.constant 3.000000e-01 : f32
    %17 = arith.subf %14, %cst_8 : f32
    %18 = vector.broadcast %17 : f32 to vector<1x1xf32>
    %19 = vector.broadcast %6 : f32 to vector<1x1xf32>
    %cst_9 = arith.constant 0.000000e+00 : f32
    %20 = vector.broadcast %cst_9 : f32 to vector<1x1xf32>
    %21 = arith.subf %20, %18 : vector<1x1xf32>
    %cst_10 = arith.constant 0.000000e+00 : f32
    %22 = vector.broadcast %cst_10 : f32 to vector<1x1xf32>
    %23 = arith.cmpf ogt, %21, %22 : vector<1x1xf32>
    %cst_11 = arith.constant 0.000000e+00 : f32
    %24 = vector.broadcast %cst_11 : f32 to vector<1x1xf32>
    %25 = arith.cmpf olt, %21, %24 : vector<1x1xf32>
    %cst_12 = arith.constant 0.000000e+00 : f32
    %cst_13 = arith.constant 5.000000e-01 : f32
    %26 = vector.broadcast %cst_12 : f32 to vector<1x1xf32>
    %27 = vector.broadcast %cst_13 : f32 to vector<1x1xf32>
    %28 = arith.select %25, %26, %27 : vector<1x1xi1>, vector<1x1xf32>
    %cst_14 = arith.constant 1.000000e+00 : f32
    %29 = vector.broadcast %cst_14 : f32 to vector<1x1xf32>
    %30 = arith.select %23, %29, %28 : vector<1x1xi1>, vector<1x1xf32>
    %cst_15 = arith.constant 1.000000e+00 : f32
    %31 = vector.broadcast %cst_15 : f32 to vector<1x1xf32>
    %32 = arith.subf %19, %31 : vector<1x1xf32>
    %cst_16 = arith.constant 1.000000e+00 : f32
    %33 = vector.broadcast %cst_16 : f32 to vector<1x1xf32>
    %34 = arith.mulf %33, %32 : vector<1x1xf32>
    %35 = math.tanh %34 : vector<1x1xf32>
    %36 = arith.mulf %30, %35 : vector<1x1xf32>
    %cst_17 = arith.constant 0.000000e+00 : f32
    %37 = vector.broadcast %cst_17 : f32 to vector<1x1xf32>
    %38 = arith.cmpf ogt, %18, %37 : vector<1x1xf32>
    %cst_18 = arith.constant 0.000000e+00 : f32
    %39 = vector.broadcast %cst_18 : f32 to vector<1x1xf32>
    %40 = arith.cmpf olt, %18, %39 : vector<1x1xf32>
    %cst_19 = arith.constant 0.000000e+00 : f32
    %cst_20 = arith.constant 5.000000e-01 : f32
    %41 = vector.broadcast %cst_19 : f32 to vector<1x1xf32>
    %42 = vector.broadcast %cst_20 : f32 to vector<1x1xf32>
    %43 = arith.select %40, %41, %42 : vector<1x1xi1>, vector<1x1xf32>
    %cst_21 = arith.constant 1.000000e+00 : f32
    %44 = vector.broadcast %cst_21 : f32 to vector<1x1xf32>
    %45 = arith.select %38, %44, %43 : vector<1x1xi1>, vector<1x1xf32>
    %46 = arith.subf %36, %45 : vector<1x1xf32>
    %cst_22 = arith.constant 1.000000e+00 : f32
    %47 = vector.broadcast %cst_22 : f32 to vector<1x1xf32>
    %48 = arith.mulf %47, %46 : vector<1x1xf32>
    %49 = arith.mulf %48, %18 : vector<1x1xf32>
    %50 = math.exp %49 : vector<1x1xf32>
    %51 = arith.mulf %19, %50 : vector<1x1xf32>
    %cst_23 = arith.constant 1.17549435E-38 : f32
    %cst_24 = arith.constant 1.000000e+00 : f32
    %52 = vector.broadcast %cst_23 : f32 to vector<1x1xf32>
    %53 = arith.maximumf %52, %51 : vector<1x1xf32>
    %54 = vector.broadcast %cst_24 : f32 to vector<1x1xf32>
    %55 = arith.minimumf %54, %53 : vector<1x1xf32>
    %56 = vector.shape_cast %55 : vector<1x1xf32> to vector<1x1x1xf32>
    %cst_25 = arith.constant dense<0.000000e+00> : vector<1xf32>
    %57 = vector.multi_reduction <add>, %56, %cst_25 [1, 2] : vector<1x1x1xf32> to vector<1xf32>
    %58 = vector.shape_cast %57 : vector<1xf32> to vector<1x1x1xf32>
    %59 = vector.extract %58[0, 0, 0] : f32 from vector<1x1x1xf32>
    %cst_26 = arith.constant 5.000000e-01 : f32
    %60 = arith.cmpf ogt, %16, %cst_26 : f32
    %61 = arith.select %60, %6, %59 : f32
    %c0_27 = arith.constant 0 : index
    %62 = memref.load %arg3[%c0_27] : memref<4xf32, #tpu.memory_space<smem>>
    memref.store %61, %arg3[%c0_27] : memref<4xf32, #tpu.memory_space<smem>>
    %c1_28 = arith.constant 1 : index
    %63 = memref.load %arg3[%c1_28] : memref<4xf32, #tpu.memory_space<smem>>
    memref.store %14, %arg3[%c1_28] : memref<4xf32, #tpu.memory_space<smem>>
    %cst_29 = arith.constant 1.000000e+00 : f32
    %c2_30 = arith.constant 2 : index
    %64 = memref.load %arg3[%c2_30] : memref<4xf32, #tpu.memory_space<smem>>
    memref.store %cst_29, %arg3[%c2_30] : memref<4xf32, #tpu.memory_space<smem>>
    %c3_31 = arith.constant 3 : index
    %65 = memref.load %arg3[%c3_31] : memref<4xf32, #tpu.memory_space<smem>>
    memref.store %16, %arg3[%c3_31] : memref<4xf32, #tpu.memory_space<smem>>
    return
  }
  func.func @transform_0(%arg0: i32) -> i32 {
    %c0_i32 = arith.constant 0 : i32
    %c0_i32_0 = arith.constant 0 : i32
    return %c0_i32 : i32
  }
  func.func @transform_1(%arg0: i32) -> (i32, i32) {
    %c0_i32 = arith.constant 0 : i32
    %c0_i32_0 = arith.constant 0 : i32
    return %arg0, %c0_i32 : i32, i32
  }
  func.func @transform_2(%arg0: i32) -> i32 {
    %c0_i32 = arith.constant 0 : i32
    %c0_i32_0 = arith.constant 0 : i32
    return %c0_i32 : i32
  }
}

</mosaic_0001>

<bundles_post_ra>
// kernel: tpu_custom_call.1
= control target key start
LH: loop header
LB: loop body
LE: loop exit
PB: predicated region body
PF: predicated region fallthrough
CT: control target
= control target key end

     0   :  { %7 = vsyncpa [#allocation4], 0  ;;  %s234_s0 = inlined_call_operand.hbm [shape: f32[4], index: 0, kind: input, shape index: {}]   ;;  %s235_s1 = inlined_call_operand.hbm [shape: f32[8,16], index: 1, kind: input, shape index: {}]   ;;  %s236_s2 = inlined_call_operand.hbm [shape: f32[4], index: 2, kind: output, shape index: {}]  }
   0x1   :  { %8 = vsyncpa [#allocation3], 0 }
   0x2   :  { %9 = vsyncpa [#allocation5], 0  ;;  %s126_s11 = scalar_lea.hbm %s234_s0, 16 }
   0x3   :  { %p127_p0 = scmp.ne.s32.totalorder %s234_s0, %s126_s11  ;;  %p130_p1 = scmp.lt.u32.totalorder %s126_s11, %s234_s0 }
   0x5   :  { %p132_p2 = pnand %p130_p1, %p127_p0 }
   0x7   :  { %135 = shalt.err (!%p132_p2)
}
   0x8   :  { %s174_s16 = smov [#allocation2]   ;;  %s175_s19 = smov [#allocation6]  }
   0x9   :  { %17 = dma.hbm_to_smem %s234_s0, 16, %s174_s16, [#allocation4]  }
   0xa   :  { %s24_s20 = sshll.u32 %s175_s19, 4  ;;  %s136_s23 = scalar_lea.hbm %s235_s1, 128  ;;  %s25_s20 = int_to_ptr.vmem [resolvable:$true] %s24_s20 }
   0xb   :  { %p137_p3 = scmp.ne.s32.totalorder %s235_s1, %s136_s23  ;;  %p140_p4 = scmp.lt.u32.totalorder %s136_s23, %s235_s1 }
   0xd   :  { %p142_p5 = pnand %p140_p4, %p137_p3 }
   0xf   :  { %145 = shalt.err (!%p142_p5)
}
  0x10   :  { %s146_s28 = scalar_lea.vmem %s25_s20, 128  ;;  %p151_p7 = scmp.lt.s32.totalorder %s25_s20, %s25_s20 }
  0x11   :  { %p147_p6 = scmp.ne.s32.totalorder %s25_s20, %s146_s28  ;;  %p152_p8 = scmp.lt.s32.totalorder %s146_s28, %s146_s28 }
  0x13   :  { %p153_p9 = por %p152_p8, %p151_p7 }
  0x15   :  { %p154_p10 = pnand %p153_p9, %p147_p6 }
  0x17   :  { %157 = shalt.err (!%p154_p10)
}
  0x18   :  { %27 = dma.hbm_to_vmem [thread:$0]  %s235_s1, 128, %s25_s20, [#allocation3]  }
  0x19   :  { %168 = dma.done.wait [#allocation4], 16  }
  0x1a   :  { %169 = vsyncadd [#allocation4], 4294967280 }
  0x1b   :  { %170 = dma.done.wait [#allocation3], 128  }
  0x1c   :  { %171 = vsyncadd [#allocation3], 4294967168 }
  0x1d   :  { %34 = sfence }
  0x1e   :  { %v35_v0 = vld [vmem:[#allocation6] sm:$0xff]  ;;  %vm36_vm0 = vcmask 130048   ;;  %s176_s30 = smov 1.0   ;;  %s218_s1 = sld [smem:[#allocation2]]  ;;  %v177_v14 = vmov 0.5  }
  0x1f   :  { %v37_v1 = vsel %vm36_vm0, %v35_v0, 0.0  ;;  %90 = sst [smem:[#allocation7 + $0x2]] %s176_s30  ;;  %s108_s3 = sld [smem:[#allocation2 + $0x1]] }
  0x20   :  { %38 = vadd.xlane.f32.xlu0 %v37_v1  ;;  %s109_s4 = sld [smem:[#allocation2 + $0x2]]  ;;  %s110_s9 = sld [smem:[#allocation2 + $0x3]] }
  0x21   :  { %s158_s15 = scalar_lea.hbm %s236_s2, 16 }
  0x22   :  { %p159_p0 = scmp.ne.s32.totalorder %s236_s2, %s158_s15  ;;  %p162_p1 = scmp.lt.u32.totalorder %s158_s15, %s236_s2 }
  0x24   :  { %v61_v9 = vstv %s218_s1  ;;  %p164_p2 = pnand %p162_p1, %p159_p0 }
  0x25   :  { %s54_s6 = smul.f32 0.9, %s108_s3  ;;  %v112_v10 = vadd.f32 -1.0, %v61_v9 }
  0x26   :  { %p52_p11 = scmp.gt.f32.partialorder %s109_s4, 0.5 }
  0x27   :  { %122 = vtanh.f32 %v112_v10 }
  0x31   :  { %v123_v13 = vpop.eup %122 }
  0xad   :  { %v39_v2 = vpop.xlane.xlu0 %38 }
  0xae   :  { %v40_v3 = vrot.slane %v39_v2, 4 }
  0xb0   :  { %v41_v4 = vadd.f32 %v40_v3, %v39_v2 }
  0xb2   :  { %v42_v5 = vrot.slane %v41_v4, 2 }
  0xb4   :  { %v43_v6 = vadd.f32 %v42_v5, %v41_v4 }
  0xb6   :  { %v44_v7 = vrot.slane %v43_v6, 1 }
  0xb8   :  { %v45_v8 = vadd.f32 %v44_v7, %v43_v6 }
  0xba   :  { %113 = vpush %v45_v8 }
  0xeb   :  { %s114_s5 = spop %113 }
  0xec   :  { %s47_s7 = smul.f32 0.0078125, %s114_s5 }
  0xee   :  { %s53_s8 = smul.f32 0.1, %s47_s7 }
  0xf0   :  { %s55_s10 = sadd.f32 %s54_s6, %s53_s8 }
  0xf2   :  { %s238_s10 = smov (!%p52_p11, %s55_s10), %s47_s7 }
  0xf3   :  { %p57_p12 = scmp.lt.f32.partialorder %s238_s10, 0.3  ;;  %s111_s11 = sadd.f32 -0.3, %s238_s10 }
  0xf4   :  { %88 = sst [smem:[#allocation7 + $0x1]] %s238_s10 }
  0xf5   :  { %v60_v11 = vstv %s111_s11  ;;  %s240_s9 = smov (%p57_p12, %s110_s9), 0.0 }
  0xf6   :  { %v62_v12 = vsub.f32 0.0, %v60_v11  ;;  %vm71_vm1 = vcmp.lt.f32.partialorder %v60_v11, 0.0  ;;  %92 = sst [smem:[#allocation7 + $0x3]] %s240_s9  ;;  %vm70_vm4 = vcmp.gt.f32.partialorder %v60_v11, 0.0  ;;  %p83_p13 = scmp.gt.f32.partialorder %s240_s9, 0.5 }
  0xf7   :  { %v72_v16 = vsel %vm71_vm1, 0.0, %v177_v14 }
  0xf8   :  { %vm63_vm2 = vcmp.gt.f32.partialorder %v62_v12, 0.0  ;;  %vm64_vm3 = vcmp.lt.f32.partialorder %v62_v12, 0.0  ;;  %v73_v19 = vsel %vm70_vm4, 1.0, %v72_v16 }
  0xf9   :  { %v65_v15 = vsel %vm64_vm3, 0.0, %v177_v14 }
  0xfa   :  { %v66_v17 = vsel %vm63_vm2, 1.0, %v65_v15 }
  0xfb   :  { %v69_v18 = vmul.f32 %v123_v13, %v66_v17 }
  0xfd   :  { %v74_v20 = vsub.f32 %v69_v18, %v73_v19 }
  0xff   :  { %v75_v21 = vmul.f32 %v74_v20, %v60_v11 }
 0x101   :  { %v76_v22 = vmul.f32 1.442695, %v75_v21 }
 0x103   :  { %124 = vpow2.f32 %v76_v22 }
 0x10d   :  { %v125_v23 = vpop.eup %124 }
 0x10e   :  { %v78_v24 = vmul.f32 %v125_v23, %v61_v9 }
 0x110   :  { %v79_v25 = vmax.f32 %v78_v24, 1.1754944e-38 }
 0x112   :  { %v80_v26 = vmin.f32 %v79_v25, 1.0 }
 0x114   :  { %115 = vpush %v80_v26 }
 0x145   :  { %s116_s12 = spop %115 }
 0x146   :  { %s242_s1 = smov (!%p83_p13, %s218_s1), %s116_s12 }
 0x147   :  { %86 = sst [smem:[#allocation7]] %s242_s1 }
 0x148   :  { %167 = shalt.err (!%p164_p2)
}
 0x149   :  { %s178_s20 = smov [#allocation7]  }
 0x14a   :  { %100 = dma.smem_to_hbm %s178_s20, 16, %s236_s2, [#allocation5]  }
 0x14b   :  { %172 = dma.done.wait [#allocation5], 16  }
 0x14c   :  { %173 = vsyncadd [#allocation5], 4294967280 }
 0x14d   :  { %104 = sfence }
 0x14e   :  { %105 = vsyncpa [#allocation3], 1 }
 0x14f   :  { %106 = vsyncpa [#allocation4], 1 }
 0x150   :  { %107 = vsyncpa [#allocation5], 1 }

</bundles_post_ra>
